<compile_context>
chip_gen: v6e
topology: v6e:2x2x1
jax: 0.10.0
libtpu: 0.0.40
codegen_flags: <defaults>
</compile_context>

<pallas_src>
import functools

import jax
import jax.numpy as jnp
from jax.experimental import pallas as pl
from jax.experimental.pallas import tpu as pltpu


def _round_up(n, m):
    return ((n + m - 1) // m) * m


def _masked_partial_sum(x_f32, center_f32, batch, tile_rows):
    """Per-row clipped L2 distance, masked to valid rows, reduced to an (8,1) block."""
    diff = x_f32 - center_f32                                    # (tb, D) f32
    dist_sq = jnp.sum(diff * diff, axis=-1, keepdims=True)       # (tb, 1)  XLU reduce
    dist = jnp.clip(jnp.sqrt(dist_sq), 1e-12, 1e12)              # EUP sqrt + clamp
    # Mask rows beyond the true batch (ragged last tile reads garbage rows).
    row = jax.lax.broadcasted_iota(jnp.int32, dist.shape, 0)     # (tb, 1)
    valid = (pl.program_id(0) * tile_rows + row) < batch
    masked = jnp.where(valid, dist, 0.0)
    partial = jnp.sum(masked)                                    # scalar f32
    # Store the partial sum in row 0 of an (8,1) sublane-aligned block.
    out_rows = jax.lax.broadcasted_iota(jnp.int32, (8, 1), 0)
    return jnp.where(out_rows == 0, partial, 0.0)


def _resident_centers_kernel(labels_ref, x_ref, centers_ref, out_ref, *, batch):
    # labels_ref: (tb, 1) int32; x_ref: (tb, D); centers_ref: (C, D) resident.
    tb = x_ref.shape[0]
    num_classes = centers_ref.shape[0]
    x = x_ref[...].astype(jnp.float32)
    centers = centers_ref[...].astype(jnp.float32)
    labels = labels_ref[...]                                               # (tb, 1)
    class_iota = jax.lax.broadcasted_iota(jnp.int32, (1, num_classes), 1)  # (1, C)
    onehot = (labels == class_iota).astype(jnp.float32)                    # (tb, C)
    center = jnp.dot(onehot, centers, preferred_element_type=jnp.float32)  # (tb, D)
    out_ref[...] = _masked_partial_sum(x, center, batch, tb)


def _gathered_centers_kernel(x_ref, center_ref, out_ref, *, batch):
    # Fallback path: centers were gathered in the wrapper.
    tb = x_ref.shape[0]
    out_ref[...] = _masked_partial_sum(
        x_ref[...].astype(jnp.float32),
        center_ref[...].astype(jnp.float32),
        batch,
        tb,
    )


def center_loss(x, labels, centers, *, block_rows=1024):
    """Pallas CenterLoss forward.

    Args:
      x:       (batch, feat_dim) float array (any float dtype).
      labels:  (batch,) int array of class indices.
      centers: (num_classes, feat_dim) float parameter.

    Returns:
      scalar float32 loss.
    """
    batch, feat_dim = x.shape
    num_classes = centers.shape[0]

    x_row_bytes = feat_dim * x.dtype.itemsize
    # Conservatively assume the constant-index centers block is double-buffered.
    centers_resident_bytes = 2 * num_classes * feat_dim * centers.dtype.itemsize
    # Keep centers VMEM-resident only if they fit comfortably (works on v7x too).
    use_resident = centers_resident_bytes <= (8 << 20)

    working_budget = 24 << 20  # ~24 MiB working set: safe on v5e/v6e/v7x
    if use_resident:
        per_row_bytes = 2 * (x_row_bytes + 4)          # double-buffered x + labels
        avail = working_budget - centers_resident_bytes
    else:
        per_row_bytes = 2 * 2 * x_row_bytes            # double-buffered x + gathered center
        avail = working_budget

    tb_budget = max(8, (avail // max(per_row_bytes, 1)) // 8 * 8)
    tb = int(min(block_rows, _round_up(batch, 8), tb_budget))
    tb = max(8, (tb // 8) * 8)
    num_tiles = pl.cdiv(batch, tb)

    vmem_need = tb * per_row_bytes + (centers_resident_bytes if use_resident else 0) + (2 * 8 * 4)
    vmem_limit = int(min(max(vmem_need + (4 << 20), 32 << 20), 64 << 20))

    compiler_params = pltpu.CompilerParams(
        dimension_semantics=("parallel",),
        vmem_limit_bytes=vmem_limit,
    )

    if use_resident:
        labels2d = labels.astype(jnp.int32).reshape(batch, 1)
        cost = pl.CostEstimate(
            flops=2 * batch * num_classes * feat_dim + 3 * batch * feat_dim,
            transcendentals=batch,
            bytes_accessed=batch * (x_row_bytes + 4)
            + num_classes * feat_dim * centers.dtype.itemsize
            + num_tiles * 8 * 4,
        )
        partials = pl.pallas_call(
            functools.partial(_resident_centers_kernel, batch=batch),
            out_shape=jax.ShapeDtypeStruct((num_tiles * 8, 1), jnp.float32),
            grid=(num_tiles,),
            in_specs=[
                pl.BlockSpec((tb, 1), lambda i: (i, 0)),                      # labels
                pl.BlockSpec((tb, feat_dim), lambda i: (i, 0)),               # x
                pl.BlockSpec((num_classes, feat_dim), lambda i: (0, 0)),      # centers (resident)
            ],
            out_specs=pl.BlockSpec((8, 1), lambda i: (i, 0)),
            compiler_params=compiler_params,
            cost_estimate=cost,
        )(labels2d, x, centers)
    else:
        # Fallback for very large (num_classes * feat_dim): gather in XLA.
        center = jnp.take(centers, labels, axis=0).astype(x.dtype)            # (B, D)
        cost = pl.CostEstimate(
            flops=3 * batch * feat_dim,
            transcendentals=batch,
            bytes_accessed=2 * batch * x_row_bytes + num_tiles * 8 * 4,
        )
        partials = pl.pallas_call(
            functools.partial(_gathered_centers_kernel, batch=batch),
            out_shape=jax.ShapeDtypeStruct((num_tiles * 8, 1), jnp.float32),
            grid=(num_tiles,),
            in_specs=[
                pl.BlockSpec((tb, feat_dim), lambda i: (i, 0)),
                pl.BlockSpec((tb, feat_dim), lambda i: (i, 0)),
            ],
            out_specs=pl.BlockSpec((8, 1), lambda i: (i, 0)),
            compiler_params=compiler_params,
            cost_estimate=cost,
        )(x, center)

    # Divisor is the true batch size; padded/garbage rows were masked to 0.
    return jnp.sum(partials) / batch


if __name__ == "__main__":
    num_classes = 10
    feat_dim = 2

    key = jax.random.PRNGKey(0)
    k_centers, k_data = jax.random.split(key)

    # Deterministic parameter init (matches torch.randn(num_classes, feat_dim)).
    centers = jax.random.normal(k_centers, (num_classes, feat_dim), dtype=jnp.float32)

    # Two cases: aligned batch (single tile) and ragged batch forced onto two
    # tiles (exercises in-kernel masking and cross-tile partial sums).
    for batch, block_rows in ((8, 1024), (13, 8)):
        kx, kl = jax.random.split(jax.random.fold_in(k_data, batch))
        x = jax.random.normal(kx, (batch, feat_dim), dtype=jnp.float32)
        labels = jax.random.randint(kl, (batch,), 0, num_classes, dtype=jnp.int32)

        loss = center_loss(x, labels, centers, block_rows=block_rows)
        jax.block_until_ready(loss)

        # Pure-JAX reference check.
        center = centers[labels]
        dist = jnp.sqrt(jnp.sum((x - center) ** 2, axis=-1))
        ref = jnp.mean(jnp.clip(dist, 1e-12, 1e12))
        assert jnp.allclose(loss, ref, rtol=1e-5, atol=1e-5), (batch, loss, ref)

    print("KERNEL_OK")
</pallas_src>

<mosaic_0001>
module attributes {stable_mosaic.version = 11 : i64} {
  func.func @_resident_centers_kernel(%arg0: i32, %arg1: memref<8x1xi32, #tpu.memory_space<vmem>>, %arg2: memref<8x2xf32, #tpu.memory_space<vmem>>, %arg3: memref<10x2xf32, #tpu.memory_space<vmem>>, %arg4: memref<8x1xf32, #tpu.memory_space<vmem>>) attributes {dimension_semantics = [#tpu.dimension_semantics<parallel>], iteration_bounds = array<i64: 1>, scalar_prefetch = 0 : i64, scratch_operands = 0 : i64, tpu.core_type = #tpu.core_type<tc>, window_params = [{transform_indices = @transform_0, window_bounds = array<i64: 8, 1>}, {transform_indices = @transform_1, window_bounds = array<i64: 8, 2>}, {pipeline_mode = #tpu.pipeline_mode<synchronous>, transform_indices = @transform_2, window_bounds = array<i64: 10, 2>}, {transform_indices = @transform_3, window_bounds = array<i64: 8, 1>}]} {
    %c0 = arith.constant 0 : index
    %c0_0 = arith.constant 0 : index
    %0 = vector.load %arg2[%c0, %c0_0] : memref<8x2xf32, #tpu.memory_space<vmem>>, vector<8x2xf32>
    %c0_1 = arith.constant 0 : index
    %c0_2 = arith.constant 0 : index
    %1 = vector.load %arg3[%c0_1, %c0_2] : memref<10x2xf32, #tpu.memory_space<vmem>>, vector<10x2xf32>
    %c0_3 = arith.constant 0 : index
    %c0_4 = arith.constant 0 : index
    %2 = vector.load %arg1[%c0_3, %c0_4] : memref<8x1xi32, #tpu.memory_space<vmem>>, vector<8x1xi32>
    %3 = tpu.iota {dimensions = array<i32: 1>} : vector<1x10xi32>
    %4 = vector.broadcast %2 : vector<8x1xi32> to vector<8x10xi32>
    %5 = vector.broadcast %3 : vector<1x10xi32> to vector<8x10xi32>
    %6 = arith.cmpi eq, %4, %5 : vector<8x10xi32>
    %7 = arith.extui %6 : vector<8x10xi1> to vector<8x10xi32>
    %8 = arith.sitofp %7 : vector<8x10xi32> to vector<8x10xf32>
    %cst = arith.constant dense<0.000000e+00> : vector<8x2xf32>
    %9 = tpu.matmul %8, %1, %cst {dimension_numbers = #tpu.dot_dimension_numbers<[1], [0], [0], [1], [0, 0, 1, 1], [], []>} : vector<8x10xf32>, vector<10x2xf32>, vector<8x2xf32> -> vector<8x2xf32>
    %10 = arith.subf %0, %9 : vector<8x2xf32>
    %11 = arith.mulf %10, %10 : vector<8x2xf32>
    %cst_5 = arith.constant dense<0.000000e+00> : vector<8xf32>
    %12 = vector.multi_reduction <add>, %11, %cst_5 [1] : vector<8x2xf32> to vector<8xf32>
    %13 = vector.shape_cast %12 : vector<8xf32> to vector<8x1xf32>
    %14 = math.sqrt %13 : vector<8x1xf32>
    %cst_6 = arith.constant 9.99999996E-13 : f32
    %cst_7 = arith.constant 9.99999995E+11 : f32
    %15 = vector.broadcast %cst_6 : f32 to vector<8x1xf32>
    %16 = arith.maximumf %15, %14 : vector<8x1xf32>
    %17 = vector.broadcast %cst_7 : f32 to vector<8x1xf32>
    %18 = arith.minimumf %17, %16 : vector<8x1xf32>
    %19 = tpu.iota {dimensions = array<i32: 0>} : vector<8x1xi32>
    %c8_i32 = arith.constant 8 : i32
    %20 = arith.muli %arg0, %c8_i32 : i32
    %21 = vector.broadcast %20 : i32 to vector<8x1xi32>
    %22 = arith.addi %21, %19 : vector<8x1xi32>
    %c8_i32_8 = arith.constant 8 : i32
    %23 = vector.broadcast %c8_i32_8 : i32 to vector<8x1xi32>
    %24 = arith.cmpi slt, %22, %23 : vector<8x1xi32>
    %cst_9 = arith.constant 0.000000e+00 : f32
    %25 = vector.broadcast %cst_9 : f32 to vector<8x1xf32>
    %26 = arith.select %24, %18, %25 : vector<8x1xi1>, vector<8x1xf32>
    %27 = vector.shape_cast %26 : vector<8x1xf32> to vector<1x8x1xf32>
    %cst_10 = arith.constant dense<0.000000e+00> : vector<1xf32>
    %28 = vector.multi_reduction <add>, %27, %cst_10 [1, 2] : vector<1x8x1xf32> to vector<1xf32>
    %29 = vector.shape_cast %28 : vector<1xf32> to vector<1x1x1xf32>
    %30 = vector.extract %29[0, 0, 0] : f32 from vector<1x1x1xf32>
    %31 = tpu.iota {dimensions = array<i32: 0>} : vector<8x1xi32>
    %c0_i32 = arith.constant 0 : i32
    %32 = vector.broadcast %c0_i32 : i32 to vector<8x1xi32>
    %33 = arith.cmpi eq, %31, %32 : vector<8x1xi32>
    %cst_11 = arith.constant 0.000000e+00 : f32
    %34 = vector.broadcast %30 : f32 to vector<8x1xf32>
    %35 = vector.broadcast %cst_11 : f32 to vector<8x1xf32>
    %36 = arith.select %33, %34, %35 : vector<8x1xi1>, vector<8x1xf32>
    %c0_12 = arith.constant 0 : index
    %c0_13 = arith.constant 0 : index
    %37 = vector.load %arg4[%c0_12, %c0_13] : memref<8x1xf32, #tpu.memory_space<vmem>>, vector<8x1xf32>
    tpu.vector_store %arg4[%c0_12, %c0_13], %36 {strides = array<i32>} : memref<8x1xf32, #tpu.memory_space<vmem>>, vector<8x1xf32>,
    return
  }
  func.func @transform_0(%arg0: i32) -> (i32, i32) {
    %c0_i32 = arith.constant 0 : i32
    %c0_i32_0 = arith.constant 0 : i32
    return %arg0, %c0_i32 : i32, i32
  }
  func.func @transform_1(%arg0: i32) -> (i32, i32) {
    %c0_i32 = arith.constant 0 : i32
    %c0_i32_0 = arith.constant 0 : i32
    return %arg0, %c0_i32 : i32, i32
  }
  func.func @transform_2(%arg0: i32) -> (i32, i32) {
    %c0_i32 = arith.constant 0 : i32
    %c0_i32_0 = arith.constant 0 : i32
    %c0_i32_1 = arith.constant 0 : i32
    return %c0_i32, %c0_i32_0 : i32, i32
  }
  func.func @transform_3(%arg0: i32) -> (i32, i32) {
    %c0_i32 = arith.constant 0 : i32
    %c0_i32_0 = arith.constant 0 : i32
    return %arg0, %c0_i32 : i32, i32
  }
}

</mosaic_0001>

<bundles_post_ra>
// kernel: tpu_custom_call.1
= control target key start
LH: loop header
LB: loop body
LE: loop exit
PB: predicated region body
PF: predicated region fallthrough
CT: control target
= control target key end

     0   :  { %vm30_vm0 = vcmask 1041408   ;;  %v166_v0 = vmov 0   ;;  %v167_v2 = vmov 0.0   ;;  %vm168_vm1 = vmmov 0   ;;  %s206_s0 = inlined_call_operand.vmem [shape: s32[8,1], index: 0, kind: input, shape index: {}]   ;;  %s207_s2 = inlined_call_operand.vmem [shape: f32[10,2], index: 2, kind: input, shape index: {}]   ;;  %s208_s1 = inlined_call_operand.vmem [shape: f32[8,2], index: 1, kind: input, shape index: {}]   ;;  %s209_s3 = inlined_call_operand.vmem [shape: f32[8,1], index: 3, kind: output, shape index: {}]  }
   0x1   :  { %163 = vset.pattern.permute.xlu0 %v166_v0  ;;  %v17_v1 = vld [vmem:[%s206_s0] sm:$0xff]  ;;  %151 = vmatprep.subr.mxu0 %v167_v2  ;;  %v16_v3 = vld [vmem:[%s207_s2 + $0x8] sm:$0x3]  ;;  %v18_v5 = vlaneseq  ;;  %vm26_vm2 = vcmask 80896   ;;  %vm106_vm4 = vcmask 15360   ;;  %vm126_vm7 = vcmask 7168  }
   0x2   :  { %v15_v4 = vld [vmem:[%s207_s2] sm:$0xff]  ;;  %21 = vperm.xlu0 %163, %v17_v1   ;;  %152 = vmatpush3.msk.msra.mxu0 %vm30_vm0, %v16_v3 }
   0x3   :  { %153 = vmatprep.subr.mxu0 %v167_v2  ;;  %155 = vmatprep.mubr.msk.f32.mxu0 %vm168_vm1, %v167_v2  ;;  %v19_v6 = vand.u32 127, %v18_v5  ;;  %v14_v9 = vld [vmem:[%s208_s1] sm:$0xff]  ;;  %v120_v31 = vshrl.u32 %v18_v5, 7 }
   0x4   :  { %154 = vmatpush3.msra.mxu0 %v15_v4 }
   0x5   :  { %vm137_vm8 = vcmp.eq.s32.totalorder %v120_v31, 0 }
  0x7d   :  { %v22_v7 = vpop.permute.xlu0 %21 }
  0x7e   :  { %vm23_vm3 = vcmp.eq.s32.totalorder %v22_v7, %v19_v6 }
  0x7f   :  { %v145_v8 = vsel %vm23_vm3, 1.0, %v167_v2 }
  0x80   :  { %156 = vmatmul.mubr.msk.f32.vlgmr.msra.gmra.mxu0 %vm26_vm2, %v145_v8 }
 0x140   :  { %v100_v10 = vpop.f32.mrf.mxu0 }
 0x141   :  { %v104_v11 = vsub.f32 %v14_v9, %v100_v10 }
 0x142   :  { %v157_v12 = vpop.f32.mrf.mxu0 }
 0x143   :  { %v105_v13 = vmul.f32 %v104_v11, %v104_v11 }
 0x145   :  { %v107_v14 = vsel %vm106_vm4, %v105_v13, 0.0 }
 0x146   :  { %108 = vadd.xlane.f32.xlu0 %v107_v14 }
 0x1cf   :  { %v109_v15 = vpop.xlane.xlu0 %108 }
 0x1d0   :  { %164 = vrsqrt.f32 %v109_v15  ;;  %vm112_vm5 = vcmp.eq.f32.partialorder %v109_v15, inf  ;;  %v115_v18 = vand.u32 2147483648, %v109_v15  ;;  %vm114_vm6 = vcmp.eq.f32.partialorder %v109_v15, 0.0 }
 0x1dd   :  { %v165_v16 = vpop.eup %164 }
 0x1de   :  { %v111_v17 = vmul.f32 %v165_v16, %v109_v15 }
 0x1e0   :  { %v113_v19 = vsel %vm112_vm5, %v109_v15, %v111_v17 }
 0x1e1   :  { %v116_v20 = vsel %vm114_vm6, %v115_v18, %v113_v19 }
 0x1e2   :  { %v117_v21 = vmax.f32 %v116_v20, 1e-12 }
 0x1e4   :  { %v118_v22 = vmin.f32 %v117_v21, 1e+12 }
 0x1e6   :  { %v127_v23 = vsel %vm126_vm7, %v118_v22, 0.0 }
 0x1e7   :  { %128 = vadd.xlane.f32.xlu1 %v127_v23 }
 0x270   :  { %v129_v24 = vpop.xlane.xlu1 %128 }
 0x271   :  { %v130_v25 = vrot.slane %v129_v24, 4 }
 0x273   :  { %v131_v26 = vadd.f32 %v130_v25, %v129_v24 }
 0x275   :  { %v132_v27 = vrot.slane %v131_v26, 2 }
 0x277   :  { %v133_v28 = vadd.f32 %v132_v27, %v131_v26 }
 0x279   :  { %v134_v29 = vrot.slane %v133_v28, 1 }
 0x27b   :  { %v135_v30 = vadd.f32 %v134_v29, %v133_v28 }
 0x27d   :  { %158 = vpush %v135_v30 }
 0x2ae   :  { %s159_s1 = spop %158 }
 0x2af   :  { %v138_v32 = vstv %s159_s1 }
 0x2b0   :  { %v139_v33 = vsel %vm137_vm8, %v138_v32, 0.0 }
 0x2b1   :  { %140 = vst.msk [vmem:[%s209_s3] sm:$0xff] %vm126_vm7, %v139_v33 }

</bundles_post_ra>
